<compile_context>
chip_gen: v5e
topology: v5e:2x2
jax: 0.10.0
libtpu: 0.0.40
codegen_flags: <defaults>
</compile_context>

<pallas_src>
import jax
import jax.numpy as jnp
import numpy as np
from jax.experimental import pallas as pl
from jax.experimental.pallas import tpu as pltpu


_REGRESSION_HEADS = ['reg', 'wh', 'tracking', 'ltrb', 'ltrb_amodal',
                     'hps', 'dep', 'dim', 'amodel_offset', 'velocity']


# ---------------------------------------------------------------------------
# Fused kernel factory
# ---------------------------------------------------------------------------
def _make_generic_loss_kernel(has_hm, c_hm, reg_dims, tile_p, m):
    """Input refs (in order):
         obj_int (1,M,2) i32  : [ind, cat]
         obj_flt (1,M,Kf) f32 : [hm_mask | per head: mask(C_h), target(C_h)]
         [hm logits (1,C,Tp), hm target (1,C,Tp)]   if has_hm
         [feat_h (1,C_h,Tp)] * n_reg
       Output ref:
         out (1,1,128) f32 — lane 0: neg, 1: pos, 2: num_pos,
                             lane 3+2i: l1_sum head i, lane 4+2i: mask_sum head i
    """
    n_reg = len(reg_dims)

    def kernel(*refs):
        obj_int_ref = refs[0]
        obj_flt_ref = refs[1]
        idx = 2
        if has_hm:
            hm_x_ref = refs[idx]
            hm_t_ref = refs[idx + 1]
            idx += 2
        reg_refs = refs[idx:idx + n_reg]
        out_ref = refs[idx + n_reg]

        pt = pl.program_id(1)

        lane = jax.lax.broadcasted_iota(jnp.int32, (1, 128), 1)

        def lane_oh(k):
            return (lane == k).astype(jnp.float32)

        ind = obj_int_ref[0, :, 0:1]                      # (M, 1) flat pixel idx
        local = ind - pt * tile_p                          # (M, 1)
        in_tile = jnp.logical_and(local >= 0, local < tile_p)

        # ---- tile 0: init output row with the once-per-batch mask sums ------
        @pl.when(pt == 0)
        def _init():
            row = jnp.zeros((1, 128), jnp.float32)
            foff = 1
            if has_hm:
                w0 = obj_flt_ref[0, :, 0:1]
                row = row + jnp.sum(w0) * lane_oh(2)
            for i, c_h in enumerate(reg_dims):
                rmask = obj_flt_ref[0, :, foff:foff + c_h]
                row = row + jnp.sum(rmask) * lane_oh(4 + 2 * i)
                foff += 2 * c_h
            out_ref[0] = row

        # ---- dense focal negative term (all pixels, every tile) -------------
        if has_hm:
            x = hm_x_ref[0].astype(jnp.float32)            # (C, Tp) raw logits
            t = hm_t_ref[0].astype(jnp.float32)
            # _sigmoid(): clamp(sigmoid(x), 1e-4, 1 - 1e-4)
            outp = jnp.clip(jax.nn.sigmoid(x), 1e-4, 1.0 - 1e-4)
            omt = 1.0 - t
            omt2 = omt * omt
            gt = omt2 * omt2                               # (1 - target)^4, VPU only
            neg = jnp.sum(jnp.log(1.0 - outp) * outp * outp * gt)
            out_ref[0] = out_ref[0] + neg * lane_oh(0)

        # ---- object-side work: skipped entirely on object-free tiles --------
        has_obj = jnp.sum(in_tile.astype(jnp.int32)) > 0

        @pl.when(has_obj)
        def _objects():
            lane_iota = jax.lax.broadcasted_iota(jnp.int32, (m, tile_p), 1)
            onehot_p = (lane_iota == local).astype(jnp.float32)      # (M, Tp)

            # single fused NT matmul over all heads' channels
            feats = []
            if has_hm:
                feats.append(x)
            for r in reg_refs:
                feats.append(r[0].astype(jnp.float32))
            feat_all = feats[0] if len(feats) == 1 else jnp.concatenate(feats, axis=0)
            g = jax.lax.dot_general(onehot_p, feat_all,
                                    (((1,), (1,)), ((), ())),
                                    preferred_element_type=jnp.float32)  # (M, C_total)

            contrib = jnp.zeros((1, 128), jnp.float32)
            off = 0

            # -------- FastFocalLoss positive term --------
            if has_hm:
                raw = g[:, 0:c_hm]                         # (M, C_hm) gathered logits
                cat = obj_int_ref[0, :, 1:2]               # (M, 1)
                ch_iota = jax.lax.broadcasted_iota(jnp.int32, (m, c_hm), 1)
                onehot_c = (ch_iota == cat).astype(jnp.float32)
                raw_sel = jnp.sum(raw * onehot_c, axis=1, keepdims=True)   # (M, 1)
                pred = jnp.clip(jax.nn.sigmoid(raw_sel), 1e-4, 1.0 - 1e-4)
                w = obj_flt_ref[0, :, 0:1]
                valid = jnp.logical_and(in_tile, w > 0)    # guards padded inds / log(0)
                one_m = 1.0 - pred
                pos = jnp.sum(jnp.where(valid, jnp.log(pred) * one_m * one_m * w, 0.0))
                contrib = contrib + pos * lane_oh(1)
                off = c_hm

            # -------- RegWeightedL1Loss heads --------
            foff = 1
            for i, c_h in enumerate(reg_dims):
                pred_h = g[:, off:off + c_h]
                rmask = obj_flt_ref[0, :, foff:foff + c_h]
                rtgt = obj_flt_ref[0, :, foff + c_h:foff + 2 * c_h]
                # |pred*mask - target*mask| == |(pred - target) * mask|
                diff = jnp.abs((pred_h - rtgt) * rmask)
                l1 = jnp.sum(jnp.where(in_tile, diff, 0.0))
                contrib = contrib + l1 * lane_oh(3 + 2 * i)
                off += c_h
                foff += 2 * c_h

            out_ref[0] = out_ref[0] + contrib

    return kernel


# ---------------------------------------------------------------------------
# Generation-aware tile / VMEM sizing
# ---------------------------------------------------------------------------
def _vmem_capacity_bytes():
    try:
        info = pltpu.get_tpu_info()
        cap = getattr(info, 'vmem_capacity_bytes', None)
        if cap:
            return int(cap)
    except Exception:
        pass
    return 64 * 1024 * 1024   # conservative (v7x per-TC)


def _choose_tile_p(P, stream_channels, requested=None):
    if requested is not None:
        if P % requested != 0 or (requested % 128 != 0 and requested != P):
            raise ValueError("tile_p must divide P and be a multiple of 128 (or == P)")
        return requested
    cap = _vmem_capacity_bytes()
    budget = min(80 << 20, cap // 2)                # double-buffered stream budget
    # per-step streamed bytes ~= 2 (double buffer) * stream_channels * tile * 4
    tile_cap = budget // (8 * max(stream_channels, 1))
    if P <= tile_cap:
        return P
    t = (min(tile_cap, P) // 128) * 128
    while t >= 128:
        if P % t == 0:
            return t
        t -= 128
    return P  # TODO(synk): pad P when H*W has no suitable multiple-of-128 divisor


# ---------------------------------------------------------------------------
# Wrapper: one fused pallas_call per stack
# ---------------------------------------------------------------------------
def fused_generic_loss(output, batch, reg_heads, has_hm, tile_p=None):
    if not has_hm and not reg_heads:
        return {}

    ref_feat = output['hm'] if has_hm else output[reg_heads[0]]
    B, _, H, W = ref_feat.shape
    P = H * W
    M = batch['ind'].shape[1]
    reg_dims = [int(output[h].shape[1]) for h in reg_heads]
    C_hm = int(output['hm'].shape[1]) if has_hm else 0
    stream_channels = (2 * C_hm if has_hm else 0) + sum(reg_dims)

    tile = _choose_tile_p(P, stream_channels, tile_p)
    n_tiles = P // tile

    # ---- pack the per-object micro-inputs (few refs, lane-contiguous) ----
    ind = batch['ind'].astype(jnp.int32).reshape(B, M, 1)
    cat = (batch['cat'].astype(jnp.int32).reshape(B, M, 1) if has_hm
           else jnp.zeros((B, M, 1), jnp.int32))
    obj_int = jnp.concatenate([ind, cat], axis=-1)                 # (B, M, 2)

    flt_parts = [batch['mask'].astype(jnp.float32).reshape(B, M, 1) if has_hm
                 else jnp.zeros((B, M, 1), jnp.float32)]
    for h in reg_heads:
        flt_parts.append(batch[h + '_mask'].astype(jnp.float32))   # (B, M, C_h)
        flt_parts.append(batch[h].astype(jnp.float32))             # (B, M, C_h)
    obj_flt = jnp.concatenate(flt_parts, axis=-1)                  # (B, M, Kf)
    Kf = int(obj_flt.shape[-1])

    feat_map = lambda b, p: (b, 0, p)      # (1, C, tile) blocks of (B, C, P)
    per_b_map = lambda b, p: (b, 0, 0)     # per-batch small blocks / accumulators

    args = [obj_int, obj_flt]
    in_specs = [pl.BlockSpec((1, M, 2), per_b_map),
                pl.BlockSpec((1, M, Kf), per_b_map)]
    if has_hm:
        args += [output['hm'].reshape(B, C_hm, P),            # raw logits, native dtype
                 batch['hm'].reshape(B, C_hm, P)]
        in_specs += [pl.BlockSpec((1, C_hm, tile), feat_map)] * 2
    for h, C_h in zip(reg_heads, reg_dims):
        args.append(output[h].reshape(B, C_h, P))
        in_specs.append(pl.BlockSpec((1, C_h, tile), feat_map))

    cap = _vmem_capacity_bytes()
    need = 2 * stream_channels * tile * 4 + 4 * M * (2 + Kf) + (1 << 20)
    vmem_limit = int(min(cap - (8 << 20), max(32 << 20, 2 * need)))

    out = pl.pallas_call(
        _make_generic_loss_kernel(has_hm, C_hm, reg_dims, tile, M),
        grid=(B, n_tiles),
        in_specs=in_specs,
        out_specs=pl.BlockSpec((1, 1, 128), per_b_map),
        out_shape=jax.ShapeDtypeStruct((B, 1, 128), jnp.float32),
        compiler_params=pltpu.CompilerParams(
            dimension_semantics=("parallel", "arbitrary"),
            vmem_limit_bytes=vmem_limit),
    )(*args)

    # Tiny scalar combine of the per-batch lane-packed partial sums.
    sums = jnp.sum(out[:, 0, :], axis=0)                           # (128,)
    losses = {}
    if has_hm:
        neg, pos, npos = sums[0], sums[1], sums[2]
        losses['hm'] = jnp.where(npos == 0, -neg,
                                 -(pos + neg) / jnp.maximum(npos, 1.0))
    for i, h in enumerate(reg_heads):
        losses[h] = sums[3 + 2 * i] / (sums[4 + 2 * i] + 1e-4)
    return losses


# ---------------------------------------------------------------------------
# GenericLoss
# ---------------------------------------------------------------------------
class GenericLossPallas:
    def __init__(self, heads, weights, num_stacks=1, tile_p=None):
        self.heads = heads          # dict: head name -> head dim
        self.weights = weights      # dict: head name -> loss weight
        self.num_stacks = num_stacks
        self.tile_p = tile_p

    def __call__(self, outputs, batch):
        losses = {head: 0.0 for head in self.heads}
        for s in range(self.num_stacks):
            output = outputs[s]
            has_hm = 'hm' in output
            reg_heads = [h for h in _REGRESSION_HEADS if h in output]
            stack_losses = fused_generic_loss(output, batch, reg_heads, has_hm,
                                              tile_p=self.tile_p)
            for h, v in stack_losses.items():
                losses[h] = losses[h] + v / self.num_stacks
        tot = 0.0
        for head in self.heads:
            tot = tot + self.weights[head] * losses[head]
        losses['tot'] = tot
        return tot, losses


# ---------------------------------------------------------------------------
# Pure-JAX reference (for correctness check in the demo)
# ---------------------------------------------------------------------------
def _reference_losses(output, batch, reg_heads, has_hm):
    losses = {}
    if has_hm:
        x = output['hm']
        B, C, H, W = x.shape
        P = H * W
        out = jnp.clip(jax.nn.sigmoid(x), 1e-4, 1.0 - 1e-4)
        t = batch['hm']
        gt = (1.0 - t) ** 4
        neg = jnp.sum(jnp.log(1.0 - out) * out * out * gt)
        outp = out.reshape(B, C, P).transpose(0, 2, 1)               # (B, P, C)
        gathered = jnp.take_along_axis(outp, batch['ind'][:, :, None], axis=1)
        pred = jnp.take_along_axis(gathered, batch['cat'][:, :, None], axis=2)[..., 0]
        mask = batch['mask'].astype(jnp.float32)
        npos = jnp.sum(mask)
        pos = jnp.sum(jnp.log(pred) * (1.0 - pred) ** 2 * mask)
        losses['hm'] = jnp.where(npos == 0, -neg, -(pos + neg) / jnp.maximum(npos, 1.0))
    for h in reg_heads:
        f = output[h]
        B, C, H, W = f.shape
        P = H * W
        fp = f.reshape(B, C, P).transpose(0, 2, 1)                   # (B, P, C)
        pred = jnp.take_along_axis(fp, batch['ind'][:, :, None], axis=1)
        mask = batch[h + '_mask'].astype(jnp.float32)
        tgt = batch[h]
        l1 = jnp.sum(jnp.abs(pred * mask - tgt * mask))
        losses[h] = l1 / (jnp.sum(mask) + 1e-4)
    return losses


# ---------------------------------------------------------------------------
# Demo
# ---------------------------------------------------------------------------
if __name__ == "__main__":
    key = jax.random.PRNGKey(0)
    B, NC, H, W, M = 2, 4, 16, 16, 8      # batch, num classes, spatial, max objs
    P = H * W

    heads = {'hm': NC, 'reg': 2, 'wh': 2}
    weights = {'hm': 1.0, 'reg': 1.0, 'wh': 0.1}

    ks = jax.random.split(key, 12)
    # model outputs (one stack), NCHW like PyTorch
    outputs = [{
        'hm':  jax.random.normal(ks[0], (B, NC, H, W), jnp.float32),
        'reg': jax.random.normal(ks[1], (B, 2, H, W), jnp.float32),
        'wh':  jax.random.normal(ks[2], (B, 2, H, W), jnp.float32),
    }]
    # batch / ground-truth tensors; ind restricted to the first half of the map so
    # the second P tile exercises the "object-free tile" skip path.
    batch = {
        'hm':       jax.random.uniform(ks[3], (B, NC, H, W), jnp.float32),
        'ind':      jax.random.randint(ks[4], (B, M), 0, P // 2, jnp.int32),
        'mask':     jax.random.bernoulli(ks[5], 0.7, (B, M)).astype(jnp.float32),
        'cat':      jax.random.randint(ks[6], (B, M), 0, NC, jnp.int32),
        'reg':      jax.random.uniform(ks[7], (B, M, 2), jnp.float32),
        'reg_mask': jax.random.bernoulli(ks[8], 0.7, (B, M, 2)).astype(jnp.float32),
        'wh':       4.0 * jax.random.uniform(ks[9], (B, M, 2), jnp.float32),
        'wh_mask':  jax.random.bernoulli(ks[10], 0.7, (B, M, 2)).astype(jnp.float32),
    }

    ref = _reference_losses(outputs[0], batch, ['reg', 'wh'], True)
    ref_tot = sum(weights[h] * ref[h] for h in heads)

    # tile_p=128 -> 2 spatial tiles, exercising the accumulator grid path and the
    # object-free-tile skip; tile_p=None exercises the generation-aware auto tile.
    for tp in (128, None):
        loss_fn = GenericLossPallas(heads, weights, num_stacks=1, tile_p=tp)
        tot, losses = loss_fn(outputs, batch)
        tot = jax.block_until_ready(tot)
        for h in heads:
            jax.block_until_ready(losses[h])
        assert bool(jnp.isfinite(tot)), "non-finite total loss"
        for h in heads:
            np.testing.assert_allclose(np.asarray(losses[h]), np.asarray(ref[h]),
                                       rtol=1e-2, atol=1e-2)
        np.testing.assert_allclose(np.asarray(tot), np.asarray(ref_tot),
                                   rtol=1e-2, atol=1e-2)

    print("KERNEL_OK")
</pallas_src>

<mosaic_0001>
module attributes {stable_mosaic.version = 11 : i64} {
  func.func @kernel(%arg0: i32, %arg1: i32, %arg2: memref<1x8x2xi32, #tpu.memory_space<vmem>>, %arg3: memref<1x8x9xf32, #tpu.memory_space<vmem>>, %arg4: memref<1x4x128xf32, #tpu.memory_space<vmem>>, %arg5: memref<1x4x128xf32, #tpu.memory_space<vmem>>, %arg6: memref<1x2x128xf32, #tpu.memory_space<vmem>>, %arg7: memref<1x2x128xf32, #tpu.memory_space<vmem>>, %arg8: memref<1x1x128xf32, #tpu.memory_space<vmem>>) attributes {dimension_semantics = [#tpu.dimension_semantics<parallel>, #tpu.dimension_semantics<arbitrary>], iteration_bounds = array<i64: 2, 2>, scalar_prefetch = 0 : i64, scratch_operands = 0 : i64, tpu.core_type = #tpu.core_type<tc>, window_params = [{transform_indices = @transform_0, window_bounds = array<i64: 1, 8, 2>}, {transform_indices = @transform_1, window_bounds = array<i64: 1, 8, 9>}, {transform_indices = @transform_2, window_bounds = array<i64: 1, 4, 128>}, {transform_indices = @transform_3, window_bounds = array<i64: 1, 4, 128>}, {transform_indices = @transform_4, window_bounds = array<i64: 1, 2, 128>}, {transform_indices = @transform_5, window_bounds = array<i64: 1, 2, 128>}, {transform_indices = @transform_6, window_bounds = array<i64: 1, 1, 128>}]} {
    %0 = tpu.iota {dimensions = array<i32: 1>} : vector<1x128xi32>
    %c0 = arith.constant 0 : index
    %c0_0 = arith.constant 0 : index
    %c0_1 = arith.constant 0 : index
    %1 = vector.load %arg2[%c0, %c0_0, %c0_1] : memref<1x8x2xi32, #tpu.memory_space<vmem>>, vector<1x8x1xi32>
    %2 = vector.shape_cast %1 : vector<1x8x1xi32> to vector<8x1xi32>
    %c128_i32 = arith.constant 128 : i32
    %3 = arith.muli %arg1, %c128_i32 : i32
    %4 = vector.broadcast %3 : i32 to vector<8x1xi32>
    %5 = arith.subi %2, %4 : vector<8x1xi32>
    %c0_i32 = arith.constant 0 : i32
    %6 = vector.broadcast %c0_i32 : i32 to vector<8x1xi32>
    %7 = arith.cmpi sge, %5, %6 : vector<8x1xi32>
    %c128_i32_2 = arith.constant 128 : i32
    %8 = vector.broadcast %c128_i32_2 : i32 to vector<8x1xi32>
    %9 = arith.cmpi slt, %5, %8 : vector<8x1xi32>
    %10 = arith.andi %7, %9 : vector<8x1xi1>
    %c0_i32_3 = arith.constant 0 : i32
    %11 = arith.cmpi eq, %arg1, %c0_i32_3 : i32
    %12 = arith.extui %11 : i1 to i32
    %c0_i32_4 = arith.constant 0 : i32
    %13 = arith.cmpi ne, %12, %c0_i32_4 : i32
    scf.if %13 {
      %cst_26 = arith.constant 0.000000e+00 : f32
      %61 = vector.broadcast %cst_26 : f32 to vector<1x128xf32>
      %c0_27 = arith.constant 0 : index
      %c0_28 = arith.constant 0 : index
      %c0_29 = arith.constant 0 : index
      %62 = vector.load %arg3[%c0_27, %c0_28, %c0_29] : memref<1x8x9xf32, #tpu.memory_space<vmem>>, vector<1x8x1xf32>
      %63 = vector.shape_cast %62 : vector<1x8x1xf32> to vector<8x1xf32>
      %64 = vector.shape_cast %63 : vector<8x1xf32> to vector<1x8x1xf32>
      %cst_30 = arith.constant dense<0.000000e+00> : vector<1xf32>
      %65 = vector.multi_reduction <add>, %64, %cst_30 [1, 2] : vector<1x8x1xf32> to vector<1xf32>
      %66 = vector.shape_cast %65 : vector<1xf32> to vector<1x1x1xf32>
      %67 = vector.extract %66[0, 0, 0] : f32 from vector<1x1x1xf32>
      %c2_i32 = arith.constant 2 : i32
      %68 = vector.broadcast %c2_i32 : i32 to vector<1x128xi32>
      %69 = arith.cmpi eq, %0, %68 : vector<1x128xi32>
      %70 = arith.extui %69 : vector<1x128xi1> to vector<1x128xi32>
      %71 = arith.sitofp %70 : vector<1x128xi32> to vector<1x128xf32>
      %72 = vector.broadcast %67 : f32 to vector<1x128xf32>
      %73 = arith.mulf %72, %71 : vector<1x128xf32>
      %74 = arith.addf %61, %73 : vector<1x128xf32>
      %c0_31 = arith.constant 0 : index
      %c0_32 = arith.constant 0 : index
      %c1 = arith.constant 1 : index
      %75 = vector.load %arg3[%c0_31, %c0_32, %c1] : memref<1x8x9xf32, #tpu.memory_space<vmem>>, vector<1x8x2xf32>
      %76 = vector.shape_cast %75 : vector<1x8x2xf32> to vector<8x2xf32>
      %77 = vector.shape_cast %76 : vector<8x2xf32> to vector<1x8x2xf32>
      %cst_33 = arith.constant dense<0.000000e+00> : vector<1xf32>
      %78 = vector.multi_reduction <add>, %77, %cst_33 [1, 2] : vector<1x8x2xf32> to vector<1xf32>
      %79 = vector.shape_cast %78 : vector<1xf32> to vector<1x1x1xf32>
      %80 = vector.extract %79[0, 0, 0] : f32 from vector<1x1x1xf32>
      %c4_i32 = arith.constant 4 : i32
      %81 = vector.broadcast %c4_i32 : i32 to vector<1x128xi32>
      %82 = arith.cmpi eq, %0, %81 : vector<1x128xi32>
      %83 = arith.extui %82 : vector<1x128xi1> to vector<1x128xi32>
      %84 = arith.sitofp %83 : vector<1x128xi32> to vector<1x128xf32>
      %85 = vector.broadcast %80 : f32 to vector<1x128xf32>
      %86 = arith.mulf %85, %84 : vector<1x128xf32>
      %87 = arith.addf %74, %86 : vector<1x128xf32>
      %c0_34 = arith.constant 0 : index
      %c0_35 = arith.constant 0 : index
      %c5 = arith.constant 5 : index
      %88 = vector.load %arg3[%c0_34, %c0_35, %c5] : memref<1x8x9xf32, #tpu.memory_space<vmem>>, vector<1x8x2xf32>
      %89 = vector.shape_cast %88 : vector<1x8x2xf32> to vector<8x2xf32>
      %90 = vector.shape_cast %89 : vector<8x2xf32> to vector<1x8x2xf32>
      %cst_36 = arith.constant dense<0.000000e+00> : vector<1xf32>
      %91 = vector.multi_reduction <add>, %90, %cst_36 [1, 2] : vector<1x8x2xf32> to vector<1xf32>
      %92 = vector.shape_cast %91 : vector<1xf32> to vector<1x1x1xf32>
      %93 = vector.extract %92[0, 0, 0] : f32 from vector<1x1x1xf32>
      %c6_i32 = arith.constant 6 : i32
      %94 = vector.broadcast %c6_i32 : i32 to vector<1x128xi32>
      %95 = arith.cmpi eq, %0, %94 : vector<1x128xi32>
      %96 = arith.extui %95 : vector<1x128xi1> to vector<1x128xi32>
      %97 = arith.sitofp %96 : vector<1x128xi32> to vector<1x128xf32>
      %98 = vector.broadcast %93 : f32 to vector<1x128xf32>
      %99 = arith.mulf %98, %97 : vector<1x128xf32>
      %100 = arith.addf %87, %99 : vector<1x128xf32>
      %c0_37 = arith.constant 0 : index
      %c0_38 = arith.constant 0 : index
      %c0_39 = arith.constant 0 : index
      %101 = vector.load %arg8[%c0_37, %c0_38, %c0_39] : memref<1x1x128xf32, #tpu.memory_space<vmem>>, vector<1x1x128xf32>
      %102 = vector.shape_cast %101 : vector<1x1x128xf32> to vector<1x128xf32>
      %103 = vector.shape_cast %100 : vector<1x128xf32> to vector<1x1x128xf32>
      tpu.vector_store %arg8[%c0_37, %c0_38, %c0_39], %103 {strides = array<i32>} : memref<1x1x128xf32, #tpu.memory_space<vmem>>, vector<1x1x128xf32>,
    } else {
    }
    %c0_5 = arith.constant 0 : index
    %c0_6 = arith.constant 0 : index
    %c0_7 = arith.constant 0 : index
    %14 = vector.load %arg4[%c0_5, %c0_6, %c0_7] : memref<1x4x128xf32, #tpu.memory_space<vmem>>, vector<1x4x128xf32>
    %15 = vector.shape_cast %14 : vector<1x4x128xf32> to vector<4x128xf32>
    %c0_8 = arith.constant 0 : index
    %c0_9 = arith.constant 0 : index
    %c0_10 = arith.constant 0 : index
    %16 = vector.load %arg5[%c0_8, %c0_9, %c0_10] : memref<1x4x128xf32, #tpu.memory_space<vmem>>, vector<1x4x128xf32>
    %17 = vector.shape_cast %16 : vector<1x4x128xf32> to vector<4x128xf32>
    %18 = arith.negf %15 : vector<4x128xf32>
    %19 = math.exp %18 : vector<4x128xf32>
    %cst = arith.constant 1.000000e+00 : f32
    %20 = vector.broadcast %cst : f32 to vector<4x128xf32>
    %21 = arith.addf %20, %19 : vector<4x128xf32>
    %22 = arith.divf %20, %21 : vector<4x128xf32>
    %cst_11 = arith.constant 9.99999974E-5 : f32
    %cst_12 = arith.constant 0.999899983 : f32
    %23 = vector.broadcast %cst_11 : f32 to vector<4x128xf32>
    %24 = arith.maximumf %23, %22 : vector<4x128xf32>
    %25 = vector.broadcast %cst_12 : f32 to vector<4x128xf32>
    %26 = arith.minimumf %25, %24 : vector<4x128xf32>
    %cst_13 = arith.constant 1.000000e+00 : f32
    %27 = vector.broadcast %cst_13 : f32 to vector<4x128xf32>
    %28 = arith.subf %27, %17 : vector<4x128xf32>
    %29 = arith.mulf %28, %28 : vector<4x128xf32>
    %30 = arith.mulf %29, %29 : vector<4x128xf32>
    %cst_14 = arith.constant 1.000000e+00 : f32
    %31 = vector.broadcast %cst_14 : f32 to vector<4x128xf32>
    %32 = arith.subf %31, %26 : vector<4x128xf32>
    %33 = math.log %32 : vector<4x128xf32>
    %34 = arith.mulf %33, %26 : vector<4x128xf32>
    %35 = arith.mulf %34, %26 : vector<4x128xf32>
    %36 = arith.mulf %35, %30 : vector<4x128xf32>
    %37 = vector.shape_cast %36 : vector<4x128xf32> to vector<1x4x128xf32>
    %cst_15 = arith.constant dense<0.000000e+00> : vector<1xf32>
    %38 = vector.multi_reduction <add>, %37, %cst_15 [1, 2] : vector<1x4x128xf32> to vector<1xf32>
    %39 = vector.shape_cast %38 : vector<1xf32> to vector<1x1x1xf32>
    %40 = vector.extract %39[0, 0, 0] : f32 from vector<1x1x1xf32>
    %c0_16 = arith.constant 0 : index
    %c0_17 = arith.constant 0 : index
    %c0_18 = arith.constant 0 : index
    %41 = vector.load %arg8[%c0_16, %c0_17, %c0_18] : memref<1x1x128xf32, #tpu.memory_space<vmem>>, vector<1x1x128xf32>
    %42 = vector.shape_cast %41 : vector<1x1x128xf32> to vector<1x128xf32>
    %c0_i32_19 = arith.constant 0 : i32
    %43 = vector.broadcast %c0_i32_19 : i32 to vector<1x128xi32>
    %44 = arith.cmpi eq, %0, %43 : vector<1x128xi32>
    %45 = arith.extui %44 : vector<1x128xi1> to vector<1x128xi32>
    %46 = arith.sitofp %45 : vector<1x128xi32> to vector<1x128xf32>
    %47 = vector.broadcast %40 : f32 to vector<1x128xf32>
    %48 = arith.mulf %47, %46 : vector<1x128xf32>
    %49 = arith.addf %42, %48 : vector<1x128xf32>
    %c0_20 = arith.constant 0 : index
    %c0_21 = arith.constant 0 : index
    %c0_22 = arith.constant 0 : index
    %50 = vector.load %arg8[%c0_20, %c0_21, %c0_22] : memref<1x1x128xf32, #tpu.memory_space<vmem>>, vector<1x1x128xf32>
    %51 = vector.shape_cast %50 : vector<1x1x128xf32> to vector<1x128xf32>
    %52 = vector.shape_cast %49 : vector<1x128xf32> to vector<1x1x128xf32>
    tpu.vector_store %arg8[%c0_20, %c0_21, %c0_22], %52 {strides = array<i32>} : memref<1x1x128xf32, #tpu.memory_space<vmem>>, vector<1x1x128xf32>,
    %53 = arith.extui %10 : vector<8x1xi1> to vector<8x1xi32>
    %54 = vector.shape_cast %53 : vector<8x1xi32> to vector<1x8x1xi32>
    %cst_23 = arith.constant dense<0> : vector<1xi32>
    %55 = vector.multi_reduction <add>, %54, %cst_23 [1, 2] : vector<1x8x1xi32> to vector<1xi32>
    %56 = vector.shape_cast %55 : vector<1xi32> to vector<1x1x1xi32>
    %57 = vector.extract %56[0, 0, 0] : i32 from vector<1x1x1xi32>
    %c0_i32_24 = arith.constant 0 : i32
    %58 = arith.cmpi sgt, %57, %c0_i32_24 : i32
    %59 = arith.extui %58 : i1 to i32
    %c0_i32_25 = arith.constant 0 : i32
    %60 = arith.cmpi ne, %59, %c0_i32_25 : i32
    scf.if %60 {
      %61 = tpu.iota {dimensions = array<i32: 1>} : vector<8x128xi32>
      %62 = vector.broadcast %5 : vector<8x1xi32> to vector<8x128xi32>
      %63 = arith.cmpi eq, %61, %62 : vector<8x128xi32>
      %64 = arith.extui %63 : vector<8x128xi1> to vector<8x128xi32>
      %65 = arith.sitofp %64 : vector<8x128xi32> to vector<8x128xf32>
      %c0_26 = arith.constant 0 : index
      %c0_27 = arith.constant 0 : index
      %c0_28 = arith.constant 0 : index
      %66 = vector.load %arg6[%c0_26, %c0_27, %c0_28] : memref<1x2x128xf32, #tpu.memory_space<vmem>>, vector<1x2x128xf32>
      %67 = vector.shape_cast %66 : vector<1x2x128xf32> to vector<2x128xf32>
      %c0_29 = arith.constant 0 : index
      %c0_30 = arith.constant 0 : index
      %c0_31 = arith.constant 0 : index
      %68 = vector.load %arg7[%c0_29, %c0_30, %c0_31] : memref<1x2x128xf32, #tpu.memory_space<vmem>>, vector<1x2x128xf32>
      %69 = vector.shape_cast %68 : vector<1x2x128xf32> to vector<2x128xf32>
      %70 = tpu.concatenate %15, %67, %69 in 0 : vector<4x128xf32>, vector<2x128xf32>, vector<2x128xf32> -> vector<8x128xf32>
      %cst_32 = arith.constant dense<0.000000e+00> : vector<8x8xf32>
      %71 = tpu.matmul %65, %70, %cst_32 {dimension_numbers = #tpu.dot_dimension_numbers<[1], [1], [0], [0], [0, 0, 1, 0], [], []>} : vector<8x128xf32>, vector<8x128xf32>, vector<8x8xf32> -> vector<8x8xf32>
      %cst_33 = arith.constant 0.000000e+00 : f32
      %72 = vector.broadcast %cst_33 : f32 to vector<1x128xf32>
      %73 = vector.extract_strided_slice %71 {offsets = [0, 0], sizes = [8, 4], strides = [1, 1]} : vector<8x8xf32> to vector<8x4xf32>
      %c0_34 = arith.constant 0 : index
      %c0_35 = arith.constant 0 : index
      %c1 = arith.constant 1 : index
      %74 = vector.load %arg2[%c0_34, %c0_35, %c1] : memref<1x8x2xi32, #tpu.memory_space<vmem>>, vector<1x8x1xi32>
      %75 = vector.shape_cast %74 : vector<1x8x1xi32> to vector<8x1xi32>
      %76 = tpu.iota {dimensions = array<i32: 1>} : vector<8x4xi32>
      %77 = vector.broadcast %75 : vector<8x1xi32> to vector<8x4xi32>
      %78 = arith.cmpi eq, %76, %77 : vector<8x4xi32>
      %79 = arith.extui %78 : vector<8x4xi1> to vector<8x4xi32>
      %80 = arith.sitofp %79 : vector<8x4xi32> to vector<8x4xf32>
      %81 = arith.mulf %73, %80 : vector<8x4xf32>
      %cst_36 = arith.constant dense<0.000000e+00> : vector<8xf32>
      %82 = vector.multi_reduction <add>, %81, %cst_36 [1] : vector<8x4xf32> to vector<8xf32>
      %83 = vector.shape_cast %82 : vector<8xf32> to vector<8x1xf32>
      %84 = arith.negf %83 : vector<8x1xf32>
      %85 = math.exp %84 : vector<8x1xf32>
      %cst_37 = arith.constant 1.000000e+00 : f32
      %86 = vector.broadcast %cst_37 : f32 to vector<8x1xf32>
      %87 = arith.addf %86, %85 : vector<8x1xf32>
      %88 = arith.divf %86, %87 : vector<8x1xf32>
      %cst_38 = arith.constant 9.99999974E-5 : f32
      %cst_39 = arith.constant 0.999899983 : f32
      %89 = vector.broadcast %cst_38 : f32 to vector<8x1xf32>
      %90 = arith.maximumf %89, %88 : vector<8x1xf32>
      %91 = vector.broadcast %cst_39 : f32 to vector<8x1xf32>
      %92 = arith.minimumf %91, %90 : vector<8x1xf32>
      %c0_40 = arith.constant 0 : index
      %c0_41 = arith.constant 0 : index
      %c0_42 = arith.constant 0 : index
      %93 = vector.load %arg3[%c0_40, %c0_41, %c0_42] : memref<1x8x9xf32, #tpu.memory_space<vmem>>, vector<1x8x1xf32>
      %94 = vector.shape_cast %93 : vector<1x8x1xf32> to vector<8x1xf32>
      %cst_43 = arith.constant 0.000000e+00 : f32
      %95 = vector.broadcast %cst_43 : f32 to vector<8x1xf32>
      %96 = arith.cmpf ogt, %94, %95 : vector<8x1xf32>
      %97 = arith.andi %10, %96 : vector<8x1xi1>
      %cst_44 = arith.constant 1.000000e+00 : f32
      %98 = vector.broadcast %cst_44 : f32 to vector<8x1xf32>
      %99 = arith.subf %98, %92 : vector<8x1xf32>
      %100 = math.log %92 : vector<8x1xf32>
      %101 = arith.mulf %100, %99 : vector<8x1xf32>
      %102 = arith.mulf %101, %99 : vector<8x1xf32>
      %103 = arith.mulf %102, %94 : vector<8x1xf32>
      %cst_45 = arith.constant 0.000000e+00 : f32
      %104 = vector.broadcast %cst_45 : f32 to vector<8x1xf32>
      %105 = arith.select %97, %103, %104 : vector<8x1xi1>, vector<8x1xf32>
      %106 = vector.shape_cast %105 : vector<8x1xf32> to vector<1x8x1xf32>
      %cst_46 = arith.constant dense<0.000000e+00> : vector<1xf32>
      %107 = vector.multi_reduction <add>, %106, %cst_46 [1, 2] : vector<1x8x1xf32> to vector<1xf32>
      %108 = vector.shape_cast %107 : vector<1xf32> to vector<1x1x1xf32>
      %109 = vector.extract %108[0, 0, 0] : f32 from vector<1x1x1xf32>
      %c1_i32 = arith.constant 1 : i32
      %110 = vector.broadcast %c1_i32 : i32 to vector<1x128xi32>
      %111 = arith.cmpi eq, %0, %110 : vector<1x128xi32>
      %112 = arith.extui %111 : vector<1x128xi1> to vector<1x128xi32>
      %113 = arith.sitofp %112 : vector<1x128xi32> to vector<1x128xf32>
      %114 = vector.broadcast %109 : f32 to vector<1x128xf32>
      %115 = arith.mulf %114, %113 : vector<1x128xf32>
      %116 = arith.addf %72, %115 : vector<1x128xf32>
      %117 = vector.extract_strided_slice %71 {offsets = [0, 4], sizes = [8, 2], strides = [1, 1]} : vector<8x8xf32> to vector<8x2xf32>
      %c0_47 = arith.constant 0 : index
      %c0_48 = arith.constant 0 : index
      %c1_49 = arith.constant 1 : index
      %118 = vector.load %arg3[%c0_47, %c0_48, %c1_49] : memref<1x8x9xf32, #tpu.memory_space<vmem>>, vector<1x8x2xf32>
      %119 = vector.shape_cast %118 : vector<1x8x2xf32> to vector<8x2xf32>
      %c0_50 = arith.constant 0 : index
      %c0_51 = arith.constant 0 : index
      %c3 = arith.constant 3 : index
      %120 = vector.load %arg3[%c0_50, %c0_51, %c3] : memref<1x8x9xf32, #tpu.memory_space<vmem>>, vector<1x8x2xf32>
      %121 = vector.shape_cast %120 : vector<1x8x2xf32> to vector<8x2xf32>
      %122 = arith.subf %117, %121 : vector<8x2xf32>
      %123 = arith.mulf %122, %119 : vector<8x2xf32>
      %124 = math.absf %123 : vector<8x2xf32>
      %cst_52 = arith.constant 0.000000e+00 : f32
      %125 = vector.shape_cast %10 : vector<8x1xi1> to vector<8x1xi1>
      %126 = vector.broadcast %125 : vector<8x1xi1> to vector<8x2xi1>
      %127 = vector.broadcast %cst_52 : f32 to vector<8x2xf32>
      %128 = arith.select %126, %124, %127 : vector<8x2xi1>, vector<8x2xf32>
      %129 = vector.shape_cast %128 : vector<8x2xf32> to vector<1x8x2xf32>
      %cst_53 = arith.constant dense<0.000000e+00> : vector<1xf32>
      %130 = vector.multi_reduction <add>, %129, %cst_53 [1, 2] : vector<1x8x2xf32> to vector<1xf32>
      %131 = vector.shape_cast %130 : vector<1xf32> to vector<1x1x1xf32>
      %132 = vector.extract %131[0, 0, 0] : f32 from vector<1x1x1xf32>
      %c3_i32 = arith.constant 3 : i32
      %133 = vector.broadcast %c3_i32 : i32 to vector<1x128xi32>
      %134 = arith.cmpi eq, %0, %133 : vector<1x128xi32>
      %135 = arith.extui %134 : vector<1x128xi1> to vector<1x128xi32>
      %136 = arith.sitofp %135 : vector<1x128xi32> to vector<1x128xf32>
      %137 = vector.broadcast %132 : f32 to vector<1x128xf32>
      %138 = arith.mulf %137, %136 : vector<1x128xf32>
      %139 = arith.addf %116, %138 : vector<1x128xf32>
      %140 = vector.extract_strided_slice %71 {offsets = [0, 6], sizes = [8, 2], strides = [1, 1]} : vector<8x8xf32> to vector<8x2xf32>
      %c0_54 = arith.constant 0 : index
      %c0_55 = arith.constant 0 : index
      %c5 = arith.constant 5 : index
      %141 = vector.load %arg3[%c0_54, %c0_55, %c5] : memref<1x8x9xf32, #tpu.memory_space<vmem>>, vector<1x8x2xf32>
      %142 = vector.shape_cast %141 : vector<1x8x2xf32> to vector<8x2xf32>
      %c0_56 = arith.constant 0 : index
      %c0_57 = arith.constant 0 : index
      %c7 = arith.constant 7 : index
      %143 = vector.load %arg3[%c0_56, %c0_57, %c7] : memref<1x8x9xf32, #tpu.memory_space<vmem>>, vector<1x8x2xf32>
      %144 = vector.shape_cast %143 : vector<1x8x2xf32> to vector<8x2xf32>
      %145 = arith.subf %140, %144 : vector<8x2xf32>
      %146 = arith.mulf %145, %142 : vector<8x2xf32>
      %147 = math.absf %146 : vector<8x2xf32>
      %cst_58 = arith.constant 0.000000e+00 : f32
      %148 = vector.shape_cast %10 : vector<8x1xi1> to vector<8x1xi1>
      %149 = vector.broadcast %148 : vector<8x1xi1> to vector<8x2xi1>
      %150 = vector.broadcast %cst_58 : f32 to vector<8x2xf32>
      %151 = arith.select %149, %147, %150 : vector<8x2xi1>, vector<8x2xf32>
      %152 = vector.shape_cast %151 : vector<8x2xf32> to vector<1x8x2xf32>
      %cst_59 = arith.constant dense<0.000000e+00> : vector<1xf32>
      %153 = vector.multi_reduction <add>, %152, %cst_59 [1, 2] : vector<1x8x2xf32> to vector<1xf32>
      %154 = vector.shape_cast %153 : vector<1xf32> to vector<1x1x1xf32>
      %155 = vector.extract %154[0, 0, 0] : f32 from vector<1x1x1xf32>
      %c5_i32 = arith.constant 5 : i32
      %156 = vector.broadcast %c5_i32 : i32 to vector<1x128xi32>
      %157 = arith.cmpi eq, %0, %156 : vector<1x128xi32>
      %158 = arith.extui %157 : vector<1x128xi1> to vector<1x128xi32>
      %159 = arith.sitofp %158 : vector<1x128xi32> to vector<1x128xf32>
      %160 = vector.broadcast %155 : f32 to vector<1x128xf32>
      %161 = arith.mulf %160, %159 : vector<1x128xf32>
      %162 = arith.addf %139, %161 : vector<1x128xf32>
      %c0_60 = arith.constant 0 : index
      %c0_61 = arith.constant 0 : index
      %c0_62 = arith.constant 0 : index
      %163 = vector.load %arg8[%c0_60, %c0_61, %c0_62] : memref<1x1x128xf32, #tpu.memory_space<vmem>>, vector<1x1x128xf32>
      %164 = vector.shape_cast %163 : vector<1x1x128xf32> to vector<1x128xf32>
      %165 = arith.addf %164, %162 : vector<1x128xf32>
      %c0_63 = arith.constant 0 : index
      %c0_64 = arith.constant 0 : index
      %c0_65 = arith.constant 0 : index
      %166 = vector.load %arg8[%c0_63, %c0_64, %c0_65] : memref<1x1x128xf32, #tpu.memory_space<vmem>>, vector<1x1x128xf32>
      %167 = vector.shape_cast %166 : vector<1x1x128xf32> to vector<1x128xf32>
      %168 = vector.shape_cast %165 : vector<1x128xf32> to vector<1x1x128xf32>
      tpu.vector_store %arg8[%c0_63, %c0_64, %c0_65], %168 {strides = array<i32>} : memref<1x1x128xf32, #tpu.memory_space<vmem>>, vector<1x1x128xf32>,
    } else {
    }
    return
  }
  func.func @transform_0(%arg0: i32, %arg1: i32) -> (i32, i32, i32) {
    %c0_i32 = arith.constant 0 : i32
    %c0_i32_0 = arith.constant 0 : i32
    %c0_i32_1 = arith.constant 0 : i32
    return %arg0, %c0_i32, %c0_i32_0 : i32, i32, i32
  }
  func.func @transform_1(%arg0: i32, %arg1: i32) -> (i32, i32, i32) {
    %c0_i32 = arith.constant 0 : i32
    %c0_i32_0 = arith.constant 0 : i32
    %c0_i32_1 = arith.constant 0 : i32
    return %arg0, %c0_i32, %c0_i32_0 : i32, i32, i32
  }
  func.func @transform_2(%arg0: i32, %arg1: i32) -> (i32, i32, i32) {
    %c0_i32 = arith.constant 0 : i32
    %c0_i32_0 = arith.constant 0 : i32
    return %arg0, %c0_i32, %arg1 : i32, i32, i32
  }
  func.func @transform_3(%arg0: i32, %arg1: i32) -> (i32, i32, i32) {
    %c0_i32 = arith.constant 0 : i32
    %c0_i32_0 = arith.constant 0 : i32
    return %arg0, %c0_i32, %arg1 : i32, i32, i32
  }
  func.func @transform_4(%arg0: i32, %arg1: i32) -> (i32, i32, i32) {
    %c0_i32 = arith.constant 0 : i32
    %c0_i32_0 = arith.constant 0 : i32
    return %arg0, %c0_i32, %arg1 : i32, i32, i32
  }
  func.func @transform_5(%arg0: i32, %arg1: i32) -> (i32, i32, i32) {
    %c0_i32 = arith.constant 0 : i32
    %c0_i32_0 = arith.constant 0 : i32
    return %arg0, %c0_i32, %arg1 : i32, i32, i32
  }
  func.func @transform_6(%arg0: i32, %arg1: i32) -> (i32, i32, i32) {
    %c0_i32 = arith.constant 0 : i32
    %c0_i32_0 = arith.constant 0 : i32
    %c0_i32_1 = arith.constant 0 : i32
    return %arg0, %c0_i32, %c0_i32_0 : i32, i32, i32
  }
}

</mosaic_0001>

<bundles_post_ra>
// kernel: tpu_custom_call.1
= control target key start
LH: loop header
LB: loop body
LE: loop exit
PB: predicated region body
PF: predicated region fallthrough
CT: control target
= control target key end

     0   :  { %s1689_s0 = inlined_call_operand.vmem [shape: s32[2,8,2], index: 0, kind: input, shape index: {}]   ;;  %s1690_s1 = inlined_call_operand.vmem [shape: f32[2,8,9], index: 1, kind: input, shape index: {}]   ;;  %s1691_s2 = inlined_call_operand.hbm [shape: f32[2,4,256], index: 2, kind: input, shape index: {}]   ;;  %s1692_s3 = inlined_call_operand.hbm [shape: f32[2,4,256], index: 3, kind: input, shape index: {}]   ;;  %s1693_s4 = inlined_call_operand.hbm [shape: f32[2,2,256], index: 4, kind: input, shape index: {}]   ;;  %s1694_s5 = inlined_call_operand.vmem [shape: f32[2,2,256], index: 5, kind: input, shape index: {}]   ;;  %s1695_s6 = inlined_call_operand.hbm [shape: f32[2,1,128], index: 6, kind: output, shape index: {}]  }
   0x1   :  { %1709 = sst [smem:[#allocation24_spill]] %s1690_s1 }
   0x2   :  { %1710 = sst [smem:[#allocation25_spill]] %s1692_s3 }
   0x3   :  { %1711 = sst [smem:[#allocation26_spill]] %s1694_s5 }
   0x4   :  { %1712 = sst [smem:[#allocation27_spill]] %s1695_s6 }
   0x5   :  { %11 = vsyncpa [#allocation3], 0 }
   0x6   :  { %13 = vsyncpa [#allocation3 + $0x1], 0 }
   0x7   :  { %14 = vsyncpa [#allocation6], 0 }
   0x8   :  { %16 = vsyncpa [#allocation6 + $0x1], 0 }
   0x9   :  { %17 = vsyncpa [#allocation4], 0 }
   0xa   :  { %19 = vsyncpa [#allocation4 + $0x1], 0  ;;  %s1387_s21 = smov 0   ;;  %s1389_s22 = smov 0  }
   0xb   :  { %s1391_s23 = smov 0   ;;  %s1393_s24 = smov 0  }
   0xc   :  { %s1395_s25 = smov 0   ;;  %s1397_s26 = smov 0  }
   0xd   :  { %s1399_s27 = smov 0   ;;  %s1401_s28 = smov 0  }
   0xe   :  { %s1403_s29 = smov 0   ;;  %s1405_s30 = smov 0  }
   0xf   :  { %s1407_s7 = smov 0  }
  0x10 LB: > { %1713 = sst [smem:[#allocation12_spill]] %s1296_s21  ;;  %s1441_s8 = sadd.s32 4294967295, %s1336_s7   ;;  %s1336_s7 = sphi %s1407_s7, %s25_s7   ;;  %s1332_s30 = sphi %s1405_s30, %s1749_s30   ;;  %s1328_s29 = sphi %s1403_s29, %s1748_s29   ;;  %s1324_s28 = sphi %s1401_s28, %s1747_s28   ;;  %s1320_s27 = sphi %s1399_s27, %s1746_s27   ;;  %s1316_s26 = sphi %s1397_s26, %s1745_s26   ;;  %s1312_s25 = sphi %s1395_s25, %s1753_s25   ;;  %s1308_s24 = sphi %s1393_s24, %s1752_s24   ;;  %s1304_s23 = sphi %s1391_s23, %s1743_s23   ;;  %s1300_s22 = sphi %s1389_s22, %s1751_s22   ;;  %s1296_s21 = sphi %s1387_s21, %s1750_s21  }
  0x11   : > { %1714 = sst [smem:[#allocation13_spill]] %s1304_s23  ;;  %s925_s9 = sadd.s32 4294967294, %s1336_s7  }
  0x12   : > { %1715 = sst [smem:[#allocation14_spill]] %s1316_s26  ;;  %s34_s10 = sadd.s32 1, %s1328_s29 }
  0x13   : > { %1716 = sst [smem:[#allocation15_spill]] %s1328_s29  ;;  %s37_s11 = sadd.s32 1, %s1332_s30 }
  0x14   : > { %1717 = sst [smem:[#allocation16_spill]] %s1332_s30  ;;  %p35_p0 = scmp.ge.s32.totalorder %s34_s10, 2 }
  0x15   : > { %1718 = sst [smem:[#allocation17_spill]] %s1336_s7  ;;  %s98_s12 = sadd.s32 1, %s1316_s26 }
  0x16   : > { %p105_p1 = scmp.ne.s32.totalorder %s1316_s26, %s1312_s25  ;;  %p106_p2 = scmp.eq.s32.totalorder %s1336_s7, 0 }
  0x17   : > { %s1755_s10 = smov (%p35_p0, %s34_s10), 0  ;;  %s1757_s11 = smov (!%p35_p0, %s37_s11), %s1332_s30 }
  0x18   : > { %1719 = sst [smem:[#allocation18_spill]] %s1755_s10  ;;  %s94_s13 = ssub.s32 %s1328_s29, %s1755_s10 }
  0x19   : > { %p1455_p3 = por %p106_p2, %p105_p1  ;;  %p39_p4 = scmp.ge.s32.totalorder %s1757_s11, 2 }
  0x1a   : > { %p111_p5 = scmp.ne.s32.totalorder %s1312_s25, %s1308_s24  ;;  %p112_p6 = scmp.eq.s32.totalorder %s1441_s8, 0 }
  0x1b   : > { %s208_s15 = sadd.s32 1, %s1304_s23  ;;  %s1759_s11 = smov (%p39_p4, %s1757_s11), 0 }
  0x1c   : > { %1721 = sst [smem:[#allocation19_spill]] %s1759_s11  ;;  %p1464_p7 = por %p112_p6, %p111_p5 }
  0x1d   : > { %p218_p8 = scmp.ne.s32.totalorder %s1304_s23, %s1300_s22  ;;  %s93_s17 = ssub.s32 %s1332_s30, %s1759_s11 }
  0x1e   : > { %p219_p9 = scmp.eq.s32.totalorder %s1441_s8, 3  ;;  %s95_s18 = sor.u32 %s94_s13, %s93_s17 }
  0x1f   : > { %p206_p10 = scmp.eq.s32.totalorder %s93_s17, 0  ;;  %p96_p11 = scmp.eq.s32.totalorder %s95_s18, 0 }
  0x20   : > { %p1473_p12 = por %p219_p9, %p218_p8  ;;  %p224_p13 = scmp.ne.s32.totalorder %s1300_s22, %s1296_s21 }
  0x21   : > { %s1478_s20 = scalar_select %p206_p10, %s1304_s23, %s208_s15  }
  0x22   : > { %s1723_s19 = scalar_select %p1473_p12, 1, 0 }
  0x23   : > { %1725 = sst [smem:[#allocation21_spill]] %s1478_s20  ;;  %p225_p0 = scmp.eq.s32.totalorder %s925_s9, 3 }
  0x24   : > { %1724 = sst [smem:[#allocation20_spill]] %s1723_s19  ;;  %p1000_p1 = scmp.lt.s32.totalorder %s1336_s7, 4 }
  0x25   : > { %s1481_s24 = scalar_select %p96_p11, %s1316_s26, %s98_s12  }
  0x26   : > { %p1486_p2 = por %p225_p0, %p224_p13  ;;  %s1491_s13 = sand.u32 1, %s1316_s26  }
  0x27   : > { %1726 = sst [smem:[#allocation22_spill]] %s1481_s24  ;;  %s928_s17 = sshll.u32 %s1491_s13, 2 }
  0x28   : > { %s1727_s10 = scalar_select %p1486_p2, 1, 0 }
  0x29   : > { %s929_s18 = sshll.u32 %s1332_s30, 1  ;;  %p1498_p4 = pnand %p1000_p1, %p1455_p3 }
  0x2a   : > { %1728 = sst [smem:[#allocation23_spill]] %s1727_s10  ;;  %s267_s11 = sadd.s32 %s1328_s29, %s929_s18 }
  0x2b   : > { %s930_s9 = sshll.u32 %s267_s11, 2  ;;  %s280_s12 = sand.u32 1, %s1336_s7  }
  0x2c   : > { %s1730_s3 = sld [smem:[#allocation25_spill]]  ;;  %s284_s26 = scalar_lea.vmem [#allocation5], %s928_s17 }
  0x2d   : > { %s294_s21 = sshll.u32 %s284_s26, 4  ;;  %s281_s14 = scalar_lea.sflag [#allocation6], %s280_s12  ;;  %s295_s21 = int_to_ptr.vmem [resolvable:$true] %s294_s21 }
  0x2e   : > { %p937_p3 = scmp.ge.s32.totalorder %s1336_s7, 1  ;;  %p331_p5 = scmp.lt.s32.totalorder %s1336_s7, 5 }
  0x2f   : > { %s260_s29 = scalar_lea.sflag [#allocation3], %s1491_s13 }
  0x30   : > { %p1510_p6 = pnand %p937_p3, %p331_p5 }
  0x32   : > { %s290_s23 = scalar_lea.hbm %s1730_s3, %s930_s9  ;;  %s263_s3 = scalar_lea.vmem [#allocation2], %s928_s17 }
  0x33   : > { %s292_s10 = sshll.u32 %s290_s23, 4  ;;  %s269_s23 = scalar_lea.hbm %s1691_s2, %s930_s9  ;;  %s293_s10 = int_to_ptr.hbm [resolvable:$true] %s292_s10 }
  0x34   : > { %992 = dma.hbm_to_vmem [thread:$0]  (!%p1498_p4), %s293_s10, 64, %s295_s21, %s281_s14  }
  0x35   : > { %s271_s24 = sshll.u32 %s269_s23, 4  ;;  %s273_s26 = sshll.u32 %s263_s3, 4  ;;  %s272_s24 = int_to_ptr.hbm [resolvable:$true] %s271_s24  ;;  %s274_s26 = int_to_ptr.vmem [resolvable:$true] %s273_s26 }
  0x36   : > { %989 = dma.hbm_to_vmem [thread:$0]  (!%p1498_p4), %s272_s24, 64, %s274_s26, %s260_s29  }
  0x37   : > { %s934_s21 = sshll.u32 %s1491_s13, 1  ;;  %s936_s10 = sshll.u32 %s267_s11, 1 }
  0x38   : > { %s311_s19 = scalar_lea.hbm %s1693_s4, %s936_s10  ;;  %s305_s5 = scalar_lea.vmem [#allocation7], %s934_s21 }
  0x39   : > { %s313_s6 = sshll.u32 %s311_s19, 4  ;;  %s315_s1 = sshll.u32 %s305_s5, 4  ;;  %s314_s6 = int_to_ptr.hbm [resolvable:$true] %s313_s6  ;;  %s316_s1 = int_to_ptr.vmem [resolvable:$true] %s315_s1 }
  0x3a   : > { %995 = dma.hbm_to_vmem [thread:$0]  (!%p1498_p4), %s314_s6, 32, %s316_s1, %s281_s14  }
  0x3b   : > { %335 = sbr.rel (%p1510_p6) target bundleno = 1361 (0x551), region = 44  ;;  %s1529_s3 = sand.u32 (!%p1510_p6), 1, %s1312_s25  }
  0x3c   : > { %s938_s29 = sshll.u32 (!%p1510_p6), %s1529_s3, 2  ;;  %s338_s30 = scalar_lea.sflag (!%p1510_p6), [#allocation3], %s1529_s3 }
  0x3d   : > { %s1533_s7 = scalar_lea.vmem (!%p1510_p6), [#allocation2], %s938_s29 }
  0x40   : > { %1283 = dma.done.wait (%p1464_p7), %s338_s30, 64  }
  0x41   : > { %1285 = vsyncadd (%p1464_p7), %s338_s30, 4294967232  ;;  %s347_s1 = sand.u32 1, %s1441_s8   ;;  %s1540_s6 = scalar_lea.vmem [#allocation5], %s938_s29 }
  0x42   : > { %s348_s5 = scalar_lea.sflag [#allocation6], %s347_s1 }
  0x43   : > { %1287 = dma.done.wait (%p1464_p7), %s348_s5, 96  }
  0x44   : > { %1289 = vsyncadd (%p1464_p7), %s348_s5, 4294967200  ;;  %p416_p8 = scmp.lt.s32.totalorder %s1324_s28, 1  ;;  %p426_p9 = scmp.lt.s32.totalorder %s1320_s27, 1  ;;  %v432_v0 = vlaneseq }
  0x45   : > { %s945_s11 = sshll.u32 %s1320_s27, 7  ;;  %s940_s8 = sshll.u32 %s1529_s3, 1 }
  0x46   : > { %s417_s19 = scalar_select %p416_p8, %s1324_s28, 1  ;;  %v1551_v1 = vand.u32 127, %v432_v0  ;;  %v436_v2 = vstv %s945_s11 }
  0x47   : > { %s427_s13 = scalar_select %p426_p9, %s1320_s27, 1 }
  0x48   : > { %s941_s17 = sshll.u32 %s417_s19, 3  ;;  %s943_s16 = sshll.u32 %s417_s19, 1 }
  0x49   : > { %s1557_s14 = scalar_lea.vmem %s1689_s0, %s941_s17  ;;  %s1732_s23 = sld [smem:[#allocation24_spill]] }
  0x4a   : > { %s429_s26 = sadd.s32 %s943_s16, %s427_s13  ;;  %v434_v3 = vld [vmem:[%s1557_s14] sm:$0xff]  ;;  %s414_s10 = sand.u32 1, %s1300_s22  }
  0x4b   : > { %s944_s21 = sshll.u32 %s429_s26, 1  ;;  %s1733_s29 = sld [smem:[#allocation26_spill]]  ;;  %v1571_v4 = vsub.s32 %v434_v3, %v436_v2 }
  0x4c   : > { %s1579_s1 = scalar_lea.vmem [#allocation7], %s940_s8  ;;  %s1583_s5 = scalar_lea.vmem [#allocation8], %s414_s10 }
  0x4d   : > { %vm438_vm0 = vcmp.ge.s32.totalorder %v1571_v4, 0  ;;  %vm439_vm1 = vcmp.lt.s32.totalorder %v1571_v4, 128  ;;  %p946_p7 = scmp.ne.s32.totalorder %s1320_s27, 0 }
  0x4e   : > { %vm1575_vm2 = vmand %vm438_vm0, %vm439_vm1  ;;  %s1338_s11 = smov (!%p946_p7), 127   ;;  %s1339_s19 = smov (!%p946_p7), 123  }
  0x4f   : > { %s1562_s24 = scalar_lea.vmem %s1732_s23, %s941_s17  ;;  %444 = sbr.rel (%p946_p7) target bundleno = 393 (0x189), region = 60 }
  0x51   : > { %s1569_s30 = scalar_lea.vmem %s1733_s29, %s944_s21 }
  0x54   : > { %v445_v6 = vld [vmem:[%s1562_s24] sm:$0xff]  ;;  %vm446_vm3 = vcmask 7168   ;;  %vm467_vm4 = vcmask 15360   ;;  %vm478_vm5 = vcmp.eq.s32.totalorder %v1551_v1, 4  ;;  %vm457_vm6 = vcmp.eq.s32.totalorder %v1551_v1, 2 }
  0x55   : > { %464 = vrot.lane.b32.xlu0 %v445_v6, %s1338_s11  ;;  %v447_v7 = vsel %vm446_vm3, %v445_v6, 0.0  ;;  %v1340_v33 = vmov 0.0   ;;  %vm497_vm7 = vcmp.eq.s32.totalorder %v1551_v1, 6 }
  0x56   : > { %448 = vadd.xlane.f32.xlu1 %v447_v7  ;;  %v948_v34 = vsel %vm478_vm5, 1.0, %v1340_v33  ;;  %v947_v36 = vsel %vm457_vm6, 1.0, %v1340_v33  ;;  %v949_v39 = vsel %vm497_vm7, 1.0, %v1340_v33 }
  0x5d   : > { %484 = vrot.lane.b32.xlu0 %v445_v6, %s1339_s19 }
  0xc7   : > { %v465_v8 = vpop.permute.xlu0 %464 }
  0xc8   : > { %v468_v9 = vsel %vm467_vm4, %v465_v8, 0.0 }
  0xc9   : > { %469 = vadd.xlane.f32.xlu1 %v468_v9  ;;  %v449_v12 = vpop.xlane.xlu1 %448 }
  0xca   : > { %v450_v13 = vrot.slane %v449_v12, 4 }
  0xcc   : > { %v451_v14 = vadd.f32 %v450_v13, %v449_v12 }
  0xce   : > { %v452_v15 = vrot.slane %v451_v14, 2 }
  0xcf   : > { %v485_v10 = vpop.permute.xlu0 %484 }
  0xd0   : > { %v487_v11 = vsel %vm467_vm4, %v485_v10, 0.0  ;;  %v453_v16 = vadd.f32 %v452_v15, %v451_v14 }
  0xd1   : > { %488 = vadd.xlane.f32.xlu2 %v487_v11 }
  0xd2   : > { %v454_v17 = vrot.slane %v453_v16, 1 }
  0xd4   : > { %v455_v18 = vadd.f32 %v454_v17, %v453_v16 }
  0xd6   : > { %962 = vpush %v455_v18 }
 0x107   : > { %s963_s27 = spop %962 }
 0x108   : > { %v460_v37 = vstv %s963_s27 }
 0x109   : > { %v461_v40 = vmul.f32 %v947_v36, %v460_v37 }
 0x13c   : > { %v470_v19 = vpop.xlane.xlu1 %469 }
 0x13d   : > { %v471_v20 = vrot.slane %v470_v19, 4 }
 0x13f   : > { %v472_v21 = vadd.f32 %v471_v20, %v470_v19 }
 0x141   : > { %v473_v22 = vrot.slane %v472_v21, 2 }
 0x143   : > { %v474_v23 = vadd.f32 %v473_v22, %v472_v21 }
 0x144   : > { %v489_v24 = vpop.xlane.xlu2 %488 }
 0x145   : > { %v490_v25 = vrot.slane %v489_v24, 4  ;;  %v475_v26 = vrot.slane %v474_v23, 1 }
 0x147   : > { %v491_v27 = vadd.f32 %v490_v25, %v489_v24  ;;  %v476_v28 = vadd.f32 %v475_v26, %v474_v23 }
 0x149   : > { %v492_v29 = vrot.slane %v491_v27, 2  ;;  %964 = vpush %v476_v28 }
 0x14b   : > { %v493_v30 = vadd.f32 %v492_v29, %v491_v27 }
 0x14d   : > { %v494_v31 = vrot.slane %v493_v30, 1 }
 0x14f   : > { %v495_v32 = vadd.f32 %v494_v31, %v493_v30 }
 0x151   : > { %966 = vpush %v495_v32 }
 0x17a   : > { %s965_s8 = spop %964 }
 0x17b   : > { %v481_v35 = vstv %s965_s8 }
 0x17c   : > { %v482_v38 = vmul.f32 %v948_v34, %v481_v35 }
 0x17e   : > { %v483_v42 = vadd.f32 %v482_v38, %v461_v40 }
 0x182   : > { %s967_s13 = spop %966 }
 0x183   : > { %v500_v41 = vstv %s967_s13 }
 0x184   : > { %v501_v43 = vmul.f32 %v949_v39, %v500_v41 }
 0x186   : > { %v502_v44 = vadd.f32 %v501_v43, %v483_v42 }
 0x188   : > { %503 = vst [vmem:[%s1583_s5] sm:$0x1] %v502_v44 }
 0x189 PF: > { %v1592_v45 = vld [vmem:[%s1533_s7] sm:$0xf]  ;;  %v1341_v54 = vmov 0   ;;  %vm556_vm10 = vcmask 7168   ;;  %v505_v3 = vld [vmem:[%s1540_s6] sm:$0xf] }
 0x18a   : > { %v950_v46 = vmul.f32 -1.442695, %v1592_v45  ;;  %v1597_v55 = vsel %vm1575_vm2, 1, %v1341_v54  ;;  %v527_v7 = vsub.f32 1.0, %v505_v3  ;;  %vm536_vm13 = vcmask 1043456  }
 0x18b   : > { %v557_v58 = vsel %vm556_vm10, %v1597_v55, 0  ;;  %vm548_vm14 = vcmp.eq.s32.totalorder %v1551_v1, 0  ;;  %v1342_v37 = vmov 0.0  }
 0x18c   : > { %1104 = vpow2.f32 %v950_v46  ;;  %v558_v60 = vand.u32 65535, %v557_v58  ;;  %v528_v8 = vmul.f32 %v527_v7, %v527_v7  ;;  %v559_v16 = vshrl.u32 %v557_v58, 16 }
 0x18d   : > { %v951_v38 = vsel %vm548_vm14, 1.0, %v1342_v37 }
 0x18e   : > { %v560_v62 = vcvt.s32.f32 %v558_v60  ;;  %v529_v11 = vmul.f32 %v528_v8, %v528_v8  ;;  %v561_v17 = vcvt.s32.f32 %v559_v16 }
 0x18f   : > { %v547_v39 = vld [vmem:[%s1583_s5] sm:$0x1] }
 0x190   : > { %562 = vadd.xlane.f32.xlu1 %v560_v62 }
 0x192   : > { %v1105_v47 = vpop.eup %1104 }
 0x193   : > { %v509_v48 = vadd.f32 1.0, %v1105_v47 }
 0x195   : > { %1106 = vrcp.f32 %v509_v48  ;;  %vm515_vm8 = vweird.f32 %v509_v48  ;;  %v519_v51 = vand.u32 2147483647, %v509_v48  ;;  %v521_v52 = vand.u32 2147483648, %v509_v48 }
 0x197   : > { %v522_v57 = vor.u32 1.1754944e-38, %v521_v52  ;;  %vm520_vm12 = vcmp.eq.f32.partialorder %v519_v51, 8.507059e+37 }
 0x19b   : > { %v1107_v49 = vpop.eup %1106 }
 0x19c   : > { %v511_v50 = vmul.f32 %v1107_v49, %v509_v48  ;;  %vm516_vm9 = vweird.f32 %v1107_v49 }
 0x19d   : > { %vm517_vm11 = vmor %vm515_vm8, %vm516_vm9 }
 0x19e   : > { %v512_v53 = vsub.f32 1.0, %v511_v50 }
 0x1a0   : > { %v513_v56 = vmul.f32 %v1107_v49, %v512_v53 }
 0x1a2   : > { %v514_v59 = vadd.f32 %v1107_v49, %v513_v56 }
 0x1a4   : > { %v518_v61 = vsel %vm517_vm11, %v1107_v49, %v514_v59 }
 0x1a5   : > { %v523_v63 = vsel %vm520_vm12, %v522_v57, %v518_v61 }
 0x1a6   : > { %v525_v0 = vmax.f32 %v523_v63, 0.0001 }
 0x1a8   : > { %v526_v2 = vmin.f32 %v525_v0, 0.9999 }
 0x1aa   : > { %v530_v6 = vsub.f32 1.0, %v526_v2 }
 0x1ac   : > { %1108 = vlog2.f32 %v530_v6 }
 0x1b2   : > { %v1109_v9 = vpop.eup %1108 }
 0x1b3   : > { %v532_v10 = vmul.f32 0.6931472, %v1109_v9 }
 0x1b5   : > { %v533_v12 = vmul.f32 %v532_v10, %v526_v2 }
 0x1b7   : > { %v534_v13 = vmul.f32 %v533_v12, %v526_v2 }
 0x1b9   : > { %v535_v14 = vmul.f32 %v534_v13, %v529_v11 }
 0x1bb   : > { %v537_v15 = vsel %vm536_vm13, %v535_v14, 0.0 }
 0x1bc   : > { %538 = vadd.xlane.f32.xlu0 %v537_v15 }
 0x1c4   : > { %564 = vadd.xlane.f32.xlu0 %v561_v17 }
 0x203   : > { %v563_v22 = vpop.xlane.xlu1 %562 }
 0x204   : > { %v566_v26 = vcvt.f32.s32 %v563_v22 }
 0x22f   : > { %v539_v18 = vpop.xlane.xlu0 %538 }
 0x230   : > { %v540_v19 = vrot.slane %v539_v18, 4 }
 0x232   : > { %v541_v20 = vadd.f32 %v540_v19, %v539_v18 }
 0x234   : > { %v542_v21 = vrot.slane %v541_v20, 2 }
 0x236   : > { %v543_v23 = vadd.f32 %v542_v21, %v541_v20 }
 0x237   : > { %v565_v24 = vpop.xlane.xlu0 %564 }
 0x238   : > { %v567_v25 = vcvt.f32.s32 %v565_v24  ;;  %v544_v27 = vrot.slane %v543_v23, 1 }
 0x23a   : > { %v568_v28 = vshll.u32 %v567_v25, 16  ;;  %v545_v29 = vadd.f32 %v544_v27, %v543_v23 }
 0x23c   : > { %v569_v30 = vadd.s32 %v568_v28, %v566_v26  ;;  %968 = vpush %v545_v29 }
 0x23e   : > { %v570_v31 = vrot.slane %v569_v30, 4 }
 0x240   : > { %v571_v32 = vadd.s32 %v570_v31, %v569_v30 }
 0x242   : > { %v572_v33 = vrot.slane %v571_v32, 2 }
 0x244   : > { %v573_v34 = vadd.s32 %v572_v33, %v571_v32 }
 0x246   : > { %v574_v35 = vrot.slane %v573_v34, 1 }
 0x248   : > { %v575_v36 = vadd.s32 %v574_v35, %v573_v34 }
 0x24a   : > { %970 = vpush %v575_v36 }
 0x26d   : > { %s969_s7 = spop %968 }
 0x26e   : > { %v551_v40 = vstv %s969_s7 }
 0x26f   : > { %v552_v41 = vmul.f32 %v951_v38, %v551_v40 }
 0x271   : > { %v553_v42 = vadd.f32 %v552_v41, %v547_v39 }
 0x273   : > { %554 = vst [vmem:[%s1583_s5] sm:$0x1] %v553_v42 }
 0x27b   : > { %s971_s6 = spop %970 }
 0x27c   : > { %p952_p10 = scmp.le.s32.totalorder %s971_s6, 0 }
 0x27d   : > { %s1345_s17 = smov (!%p952_p10), 3   ;;  %s1346_s16 = smov (!%p952_p10), 127  }
 0x27e   : > { %580 = sbr.rel (%p952_p10) target bundleno = 1341 (0x53d), region = 64  ;;  %s1349_s15 = smov (!%p952_p10), 1  }
 0x27f   : > { %s1350_s9 = smov (!%p952_p10), 122  }
 0x283   : > { %v587_v43 = vld [vmem:[%s1579_s1] sm:$0x3]  ;;  %v588_v44 = vld [vmem:[%s1569_s30] sm:$0x3]  ;;  %v1343_v46 = vmov 0   ;;  %vm596_vm15 = vcmask 1045504  }
 0x284   : > { %1110 = vset.pattern.permute.xlu0 %v1343_v46  ;;  %v590_v47 = vrot.slane %v587_v43, 4  ;;  %v593_v48 = vrot.slane %v588_v44, 2  ;;  %1112 = vset.pattern.permute.xlu2 %v1343_v46  ;;  %v618_v51 = vld [vmem:[%s1557_s14] sm:$0xff]  ;;  %v1344_v53 = vmov 1   ;;  %v1348_v56 = vmov 0.0   ;;  %s1351_s14 = smov 124  }
 0x285   : > { %582 = vperm.xlu0 %1110, %v1571_v4   ;;  %v1613_v52 = vld [vmem:[%s1562_s24] sm:$0xff]  ;;  %vm626_vm3 = vcmask 31744   ;;  %vm696_vm12 = vcmask 15360  }
 0x286   : > { %v595_v49 = vsel %vm536_vm13, %v1592_v45, %v590_v47  ;;  %682 = vrot.lane.b32.xlu2 %v1613_v52, %s1345_s17  ;;  %v1347_v45 = vmov 1.0   ;;  %vm652_vm9 = vcmp.gt.f32.partialorder %v1613_v52, 0.0  ;;  %vm734_vm13 = vcmp.eq.s32.totalorder %v1551_v1, 5 }
 0x287   : > { %v597_v50 = vsel %vm596_vm15, %v595_v49, %v593_v48  ;;  %vm653_vm11 = vmand %vm1575_vm2, %vm652_vm9  ;;  %vm671_vm2 = vcmp.eq.s32.totalorder %v1551_v1, 1 }
 0x288   : > { %613 = vmatpush.xpose.msra.mxu0 %v597_v50 }
 0x28d   : > { %1111 = vset.pattern.permute.xlu0 %v1344_v53 }
 0x28e   : > { %620 = vperm.xlu0 %1111, %v618_v51   ;;  %713 = vrot.lane.b32.xlu2 %v1613_v52, %s1346_s16 }
 0x296   : > { %1113 = vset.pattern.permute.xlu0 %v1343_v46  ;;  %688 = vperm.xlu2 %1112, %v1597_v55  }
 0x2e0   : > { %v683_v62 = vpop.permute.xlu2 %682 }
 0x2e8   : > { %v714_v2 = vpop.permute.xlu2 %713 }
 0x2f0   : > { %v689_v10 = vpop.permute.xlu2 %688 }
 0x2f1   : > { %vm690_vm4 = vcmp.eq.s32.totalorder %v689_v10, 1 }
 0x2f7   : > { %v583_v4 = vpop.permute.xlu0 %582 }
 0x2f8   : > { %vm584_vm0 = vcmp.eq.s32.totalorder %v1551_v1, %v583_v4 }
 0x2f9   : > { %954 = vmatmul.msk.f32.vlgmr.msra.gmra.mxu0 %vm584_vm0, %v1347_v45 }
 0x300   : > { %v621_v54 = vpop.permute.xlu0 %620 }
 0x301   : > { %vm622_vm1 = vcmp.eq.s32.totalorder %v1551_v1, %v621_v54 }
 0x302   : > { %v955_v57 = vsel %vm622_vm1, 1.0, %v1348_v56 }
 0x376   : > { %v615_v58 = vpop.f32.mrf.mxu0 }
 0x377   : > { %v625_v59 = vmul.f32 %v955_v57, %v615_v58  ;;  %v716_v8 = vsub.f32 %v615_v58, %v714_v2 }
 0x379   : > { %v627_v60 = vsel %vm626_vm3, %v625_v59, 0.0 }
 0x37a   : > { %628 = vadd.xlane.f32.xlu1 %v627_v60  ;;  %v957_v60 = vsel %vm671_vm2, 1.0, %v1348_v56 }
 0x393   : > { %678 = vrot.lane.b32.xlu1 %v1613_v52, %s1349_s15 }
 0x3ed   : > { %v629_v55 = vpop.xlane.xlu1 %628 }
 0x3ee   : > { %v956_v61 = vmul.f32 -1.442695, %v629_v55 }
 0x3f0   : > { %1114 = vpow2.f32 %v956_v61 }
 0x3f6   : > { %v1115_v63 = vpop.eup %1114 }
 0x3f7   : > { %v633_v0 = vadd.f32 1.0, %v1115_v63  ;;  %v959_v63 = vsel %vm734_vm13, 1.0, %v1348_v56 }
 0x3f9   : > { %1116 = vrcp.f32 %v633_v0  ;;  %v645_v17 = vand.u32 2147483648, %v633_v0  ;;  %vm639_vm6 = vweird.f32 %v633_v0  ;;  %v643_v20 = vand.u32 2147483647, %v633_v0 }
 0x3fb   : > { %v646_v23 = vor.u32 1.1754944e-38, %v645_v17  ;;  %vm644_vm8 = vcmp.eq.f32.partialorder %v643_v20, 8.507059e+37 }
 0x3ff   : > { %v1117_v3 = vpop.eup %1116 }
 0x400   : > { %v635_v6 = vmul.f32 %v1117_v3, %v633_v0  ;;  %vm640_vm5 = vweird.f32 %v1117_v3 }
 0x401   : > { %vm641_vm7 = vmor %vm639_vm6, %vm640_vm5 }
 0x402   : > { %v636_v7 = vsub.f32 1.0, %v635_v6 }
 0x404   : > { %v637_v9 = vmul.f32 %v1117_v3, %v636_v7 }
 0x405   : > { %v679_v11 = vpop.permute.xlu1 %678 }
 0x406   : > { %v681_v12 = vsub.f32 %v615_v58, %v679_v11  ;;  %v717_v13 = vmul.f32 %v716_v8, %v679_v11  ;;  %v638_v16 = vadd.f32 %v1117_v3, %v637_v9  ;;  %v740_v8 = vld [vmem:[%s1583_s5] sm:$0x1] }
 0x408   : > { %v685_v14 = vmul.f32 %v683_v62, %v681_v12  ;;  %v718_v15 = vand.u32 2147483647, %v717_v13  ;;  %v642_v22 = vsel %vm641_vm7, %v1117_v3, %v638_v16 }
 0x409   : > { %v647_v24 = vsel %vm644_vm8, %v646_v23, %v642_v22 }
 0x40a   : > { %v686_v18 = vand.u32 2147483647, %v685_v14  ;;  %v719_v19 = vsel %vm690_vm4, %v718_v15, 0.0  ;;  %v649_v25 = vmax.f32 %v647_v24, 0.0001 }
 0x40b   : > { %721 = vrot.lane.b32.xlu2 %v719_v19, %s1350_s9 }
 0x40c   : > { %v691_v21 = vsel %vm690_vm4, %v686_v18, 0.0  ;;  %v650_v26 = vmin.f32 %v649_v25, 0.9999 }
 0x40d   : > { %693 = vrot.lane.b32.xlu0 %v691_v21, %s1351_s14 }
 0x40e   : > { %1118 = vlog2.f32 %v650_v26  ;;  %v654_v29 = vsub.f32 1.0, %v650_v26 }
 0x414   : > { %v1119_v27 = vpop.eup %1118 }
 0x415   : > { %v656_v28 = vmul.f32 0.6931472, %v1119_v27 }
 0x417   : > { %v657_v30 = vmul.f32 %v656_v28, %v654_v29 }
 0x419   : > { %v658_v31 = vmul.f32 %v657_v30, %v654_v29 }
 0x41b   : > { %v659_v32 = vmul.f32 %v658_v31, %v1613_v52 }
 0x41d   : > { %v660_v33 = vsel %vm653_vm11, %v659_v32, 0.0 }
 0x41e   : > { %v661_v34 = vsel %vm556_vm10, %v660_v33, 0.0  ;;  %vm707_vm10 = vcmp.eq.s32.totalorder %v1551_v1, 3 }
 0x41f   : > { %v958_v61 = vsel %vm707_vm10, 1.0, %v1348_v56 }
 0x437   : > { %662 = vadd.xlane.f32.xlu0 %v661_v34 }
 0x465   : > { %v722_v35 = vpop.permute.xlu2 %721 }
 0x466   : > { %v724_v36 = vsel %vm696_vm12, %v722_v35, 0.0 }
 0x467   : > { %725 = vadd.xlane.f32.xlu1 %v724_v36 }
 0x47f   : > { %v694_v37 = vpop.permute.xlu0 %693 }
 0x480   : > { %v697_v38 = vsel %vm696_vm12, %v694_v37, 0.0 }
 0x481   : > { %698 = vadd.xlane.f32.xlu2 %v697_v38 }
 0x4aa   : > { %v663_v39 = vpop.xlane.xlu0 %662 }
 0x4ab   : > { %v664_v40 = vrot.slane %v663_v39, 4 }
 0x4ad   : > { %v665_v41 = vadd.f32 %v664_v40, %v663_v39 }
 0x4af   : > { %v666_v42 = vrot.slane %v665_v41, 2 }
 0x4b1   : > { %v667_v43 = vadd.f32 %v666_v42, %v665_v41 }
 0x4b3   : > { %v668_v44 = vrot.slane %v667_v43, 1 }
 0x4b5   : > { %v669_v46 = vadd.f32 %v668_v44, %v667_v43 }
 0x4b7   : > { %972 = vpush %v669_v46 }
 0x4da   : > { %v726_v5 = vpop.xlane.xlu1 %725 }
 0x4db   : > { %v727_v47 = vrot.slane %v726_v5, 4 }
 0x4dd   : > { %v728_v48 = vadd.f32 %v727_v47, %v726_v5 }
 0x4df   : > { %v729_v49 = vrot.slane %v728_v48, 2 }
 0x4e1   : > { %v730_v53 = vadd.f32 %v729_v49, %v728_v48 }
 0x4e3   : > { %v731_v54 = vrot.slane %v730_v53, 1 }
 0x4e5   : > { %v732_v59 = vadd.f32 %v731_v54, %v730_v53 }
 0x4e8   : > { %s973_s18 = spop %972 }
 0x4e9   : > { %v674_v55 = vstv %s973_s18 }
 0x4ea   : > { %v675_v0 = vmul.f32 %v957_v60, %v674_v55 }
 0x4f4   : > { %v699_v50 = vpop.xlane.xlu2 %698 }
 0x4f5   : > { %v700_v51 = vrot.slane %v699_v50, 4 }
 0x4f7   : > { %v701_v52 = vadd.f32 %v700_v51, %v699_v50 }
 0x4f9   : > { %v702_v4 = vrot.slane %v701_v52, 2 }
 0x4fb   : > { %v703_v45 = vadd.f32 %v702_v4, %v701_v52 }
 0x4fd   : > { %v704_v57 = vrot.slane %v703_v45, 1 }
 0x4ff   : > { %v705_v58 = vadd.f32 %v704_v57, %v703_v45 }
 0x501   : > { %974 = vpush %v705_v58 }
 0x502   : > { %976 = vpush %v732_v59 }
 0x532   : > { %s975_s20 = spop %974 }
 0x533   : > { %v710_v62 = vstv %s975_s20  ;;  %s977_s23 = spop %976 }
 0x534   : > { %v711_v2 = vmul.f32 %v958_v61, %v710_v62  ;;  %v737_v3 = vstv %s977_s23 }
 0x535   : > { %v738_v7 = vmul.f32 %v959_v63, %v737_v3 }
 0x536   : > { %v712_v6 = vadd.f32 %v711_v2, %v675_v0 }
 0x538   : > { %v739_v9 = vadd.f32 %v738_v7, %v712_v6 }
 0x53a   : > { %v741_v10 = vadd.f32 %v740_v8, %v739_v9 }
 0x53c   : > { %742 = vst [vmem:[%s1583_s5] sm:$0x1] %v741_v10 }
 0x53d PF: > { %s1736_s21 = sld [smem:[#allocation27_spill]]  ;;  %s754_s30 = sshll.u32 %s1583_s5, 4  ;;  %s755_s30 = int_to_ptr.vmem [resolvable:$true] %s754_s30 }
 0x53e   : > { %s744_s11 = scalar_lea.sflag [#allocation4], %s414_s10 }
 0x543   : > { %s1737_s12 = smov %s1736_s21  ;;  %s752_s29 = scalar_lea.hbm %s1736_s21, %s1324_s28 }
 0x544   : > { %s756_s1 = sshll.u32 %s752_s29, 4  ;;  %s1230_s7 = scalar_lea.hbm %s1737_s12, 2  ;;  %s757_s1 = int_to_ptr.hbm [resolvable:$true] %s756_s1 }
 0x545   : > { %s1224_s19 = sshra.s32 %s757_s1, 4  ;;  %s1225_s19 = int_to_ptr.hbm [resolvable:$true] %s1224_s19 }
 0x546   : > { %s1226_s27 = scalar_lea.hbm %s1225_s19, 1  ;;  %p1231_p1 = scmp.lt.s32.totalorder %s1225_s19, %s1737_s12 }
 0x547   : > { %p1227_p11 = scmp.ne.s32.totalorder %s1225_s19, %s1226_s27  ;;  %p1232_p4 = scmp.lt.s32.totalorder %s1230_s7, %s1226_s27 }
 0x549   : > { %p1228_p13 = pnand %p1227_p11, %p1473_p12  ;;  %p1233_p3 = por %p1232_p4, %p1231_p1 }
 0x54b   : > { %p1229_p0 = pneg %p1228_p13 }
 0x54d   : > { %p1234_p5 = pnand %p1233_p3, %p1229_p0 }
 0x54f   : > { %1237 = shalt.err (!%p1234_p5)
}
 0x550   : > { %984 = dma.vmem_to_hbm [thread:$0]  (%p1473_p12), %s755_s30, 16, %s757_s1, %s744_s11  }
 0x551 PF: > { %s1739_s28 = sld [smem:[#allocation17_spill]] }
 0x552   : > { %s1740_s10 = sld [smem:[#allocation12_spill]] }
 0x557   : > { %p1001_p6 = scmp.ge.s32.totalorder %s1739_s28, 2 }
 0x558   : > { %s768_s16 = sand.u32 1, %s1740_s10  }
 0x559   : > { %p997_p8 = pnand %p1001_p6, %p1486_p2  ;;  %s769_s15 = scalar_lea.sflag [#allocation4], %s768_s16 }
 0x55b   : > { %p998_p9 = pneg %p997_p8 }
 0x55d   : > { %1291 = dma.done.wait (%p998_p9), %s769_s15, 16  }
 0x55e   : > { %1293 = vsyncadd (%p998_p9), %s769_s15, 4294967280  ;;  %s25_s7 = sadd.s32 1, %s1739_s28   ;;  %s1742_s9 = sld [smem:[#allocation13_spill]] }
 0x55f   : > { %p22_p7 = scmp.ge.s32.totalorder %s25_s7, 6   ;;  %s1743_s23 = sld [smem:[#allocation21_spill]] }
 0x560   : > { %s1744_s14 = sld [smem:[#allocation14_spill]]  ;;  %s1750_s21 = smov %s1300_s22 }
 0x561   : > { %s1745_s26 = sld [smem:[#allocation22_spill]]  ;;  %s1752_s24 = smov %s1312_s25 }
 0x562   : > { %s1746_s27 = sld [smem:[#allocation15_spill]]  ;;  %24 = sbr.rel (!%p22_p7) target bundleno = 16 (0x10), region = 130 }
 0x563   : > { %s1747_s28 = sld [smem:[#allocation16_spill]] }
 0x564   : > { %s1748_s29 = sld [smem:[#allocation18_spill]]  ;;  %s1751_s22 = smov %s1742_s9 }
 0x565   : > { %s1749_s30 = sld [smem:[#allocation19_spill]] }
 0x566   : > { %s1753_s25 = smov %s1744_s14 }
 0x567   :  { %774 = vsyncpa [#allocation3], 1 }
 0x568   :  { %776 = vsyncpa [#allocation3 + $0x1], 1 }
 0x569   :  { %777 = vsyncpa [#allocation6], 1 }
 0x56a   :  { %779 = vsyncpa [#allocation6 + $0x1], 1 }
 0x56b   :  { %780 = vsyncpa [#allocation4], 1 }
 0x56c   :  { %782 = vsyncpa [#allocation4 + $0x1], 1 }

</bundles_post_ra>
